<compile_context>
chip_gen: v7x
topology: tpu7x:2x2x1
jax: 0.10.0
libtpu: 0.0.40
codegen_flags: <defaults>
</compile_context>

<pallas_src>
import jax
import jax.numpy as jnp
from jax.experimental import pallas as pl
from jax.experimental.pallas import tpu as pltpu

PI = 3.141592653589793
N_SAMPLE = 40


# ---------------------------------------------------------------------------
# Pallas kernel: lane-dense occlusion  out = (thr_row > 0) * x
# ---------------------------------------------------------------------------
def _occlude_kernel(thr_ref, x_ref, o_ref):
    x = x_ref[...]                                  # (TM, TL)
    keep = (thr_ref[...] > 0.0).astype(x.dtype)     # (1, TL) shared mask row
    o_ref[...] = keep * x                           # sublane-broadcast multiply


def occlude_pallas(x, thr_row):
    """x: (..., W, H). thr_row: f32 (1, W*H). Returns mask(thr>0) * x, same shape/dtype as x."""
    orig_shape = x.shape
    w, h = x.shape[-2], x.shape[-1]
    L = w * h
    n = x.size // L
    x2 = x.reshape(n, L)
    thr2 = thr_row.reshape(1, L).astype(jnp.float32)

    itemsize = jnp.dtype(x.dtype).itemsize
    sub = {4: 8, 2: 16, 1: 32}.get(itemsize, 8)     # sublane packing granularity

    # ~2 MiB per block buffer: with in+out double-buffering (~4 live buffers)
    # this fits v5e's 16 MiB scoped VMEM and v7x's smaller physical VMEM,
    # while still reaching ~85% of HBM roofline on all generations.
    budget_bytes = 2 * 1024 * 1024
    if L * itemsize <= budget_bytes:
        tl = L                                       # full lane-dense row
    else:
        tl = max(128, ((budget_bytes // itemsize) // 128) * 128)

    if n <= sub:
        tm = n                                       # full dim (allowed by the (8,128) rule)
    else:
        tm_budget = max(sub, ((budget_bytes // (tl * itemsize)) // sub) * sub)
        # Cap TM so large batches still produce a multi-block grid
        # (lets "parallel" shard across v7x's two TensorCores).
        tm = min(tm_budget, 512, ((n + sub - 1) // sub) * sub)
        tm = max(tm, sub)

    grid = (pl.cdiv(n, tm), pl.cdiv(L, tl))

    out = pl.pallas_call(
        _occlude_kernel,
        out_shape=jax.ShapeDtypeStruct((n, L), x.dtype),
        grid=grid,
        in_specs=[
            pl.BlockSpec((1, tl), lambda i, j: (0, j)),    # shared threshold row
            pl.BlockSpec((tm, tl), lambda i, j: (i, j)),   # image rows, lane-dense
        ],
        out_specs=pl.BlockSpec((tm, tl), lambda i, j: (i, j)),
        compiler_params=pltpu.CompilerParams(
            dimension_semantics=("parallel", "parallel"),
            vmem_limit_bytes=32 * 1024 * 1024,
        ),
        # NOTE: add input_output_aliases={1: 0} when the caller donates x to do
        # the occlusion in place (skipped here: non-donated inputs would force a copy).
    )(thr2, x2)

    return out.reshape(orig_shape)


# ---------------------------------------------------------------------------
# Scalar / O(W*H) glue (plain JAX): reproduces the torch random-parameter path
# ---------------------------------------------------------------------------
def _make_threshold_row(w, h, b_value, m, corner_id):
    # Direct port of RandomStraightCut._occlude_tensor geometry:
    #   occlusion_mask = iy_grid > b + m * ix_grid   (with per-corner flips)
    # expressed as a single f32 row: thr = iy - (b + m*ix); mask = thr > 0.
    ix = jnp.linspace(0.0, 1.0, w, dtype=jnp.float32).reshape(-1, 1)
    iy = jnp.linspace(0.0, 1.0, h, dtype=jnp.float32).reshape(1, -1)
    flip_x = (corner_id == 1) | (corner_id == 3)
    flip_y = (corner_id == 2) | (corner_id == 3)
    ix = jnp.where(flip_x, 1.0 - ix, ix)
    iy = jnp.where(flip_y, 1.0 - iy, iy)
    thr = iy - (b_value + m * ix)                    # (w, h)
    return thr.reshape(1, w * h)


def _from_b_to_occlusion_fraction(b_sorted, b):
    a_first = 0.5 * (b_sorted[1] - b_sorted[0])
    a_last = 0.5 * (b_sorted[3] - b_sorted[2])
    a_trap = 1.0 - a_first - a_last

    m0 = b < b_sorted[0]
    r0 = jnp.zeros_like(b)
    m1 = (b >= b_sorted[0]) & (b < b_sorted[1])
    r1 = a_first * ((b - b_sorted[0]) / (b_sorted[1] - b_sorted[0])) ** 2
    m2 = (b >= b_sorted[1]) & (b < b_sorted[2])
    r2 = a_first + a_trap * (b - b_sorted[1]) / (b_sorted[2] - b_sorted[1])
    m3 = (b >= b_sorted[2]) & (b < b_sorted[3])
    r3 = 1.0 - a_last * ((b_sorted[3] - b) / (b_sorted[3] - b_sorted[2])) ** 2
    m4 = b >= b_sorted[3]
    r4 = jnp.ones_like(b)
    return m0 * r0 + m1 * r1 + m2 * r2 + m3 * r3 + m4 * r4


def draw_params(key, p=0.5, occlusion_fraction=(0.25, 0.45)):
    occ_min, occ_max = float(occlusion_fraction[0]), float(occlusion_fraction[1])
    k1, k2, k3, k4 = jax.random.split(key, 4)

    apply_flag = (jax.random.uniform(k1) < p).astype(jnp.int32)

    theta = jax.random.uniform(k2) * 0.25 * PI
    m = jnp.tan(theta)

    b_sorted = jnp.sort(jnp.array([0.0, 1.0, -m, 1.0 - m], dtype=jnp.float32))
    b = jnp.linspace(b_sorted[0], b_sorted[3], N_SAMPLE, dtype=jnp.float32)
    f = _from_b_to_occlusion_fraction(b_sorted, b)
    mask_select = (f >= occ_min) & (f <= occ_max)
    count = jnp.sum(mask_select.astype(jnp.int32))

    # torch: index = randint(0, count); b_value = b[mask_select][index]
    index = jax.random.randint(k3, (), 0, jnp.maximum(count, 1))
    csum = jnp.cumsum(mask_select.astype(jnp.int32))
    pick = jnp.argmax((csum == (index + 1)) & mask_select)
    b_sel = b[pick]
    # torch falls back to b_list[0] if no candidates (RuntimeError branch)
    b_value = jnp.where(count > 0, b_sel, b_sorted[0])

    corner_id = jax.random.randint(k4, (), 0, 4).astype(jnp.int32)
    return b_value.astype(jnp.float32), m.astype(jnp.float32), corner_id, apply_flag


def random_straight_cut(x, key, p=0.5, occlusion_fraction=(0.25, 0.45)):
    b_value, m, corner_id, apply_flag = draw_params(key, p=p,
                                                    occlusion_fraction=occlusion_fraction)
    w, h = x.shape[-2], x.shape[-1]
    thr_row = _make_threshold_row(w, h, b_value, m, corner_id)

    # Short-circuit the "not applied" case: skip the full HBM read+write entirely.
    out = jax.lax.cond(apply_flag == 1,
                       lambda xx: occlude_pallas(xx, thr_row),
                       lambda xx: xx,
                       x)
    return out, (b_value, m, corner_id, apply_flag)


# ---------------------------------------------------------------------------
# Pure-JAX reference of the occlusion (for sanity check only)
# ---------------------------------------------------------------------------
def _reference(x, b_value, m, corner_id, apply_flag):
    w, h = x.shape[-2], x.shape[-1]
    thr = _make_threshold_row(w, h, b_value, m, corner_id).reshape(w, h)
    mask = (thr > 0.0).astype(x.dtype)
    occluded = mask * x
    return jnp.where(apply_flag == 1, occluded, x)


if __name__ == "__main__":
    key = jax.random.PRNGKey(0)
    kx, kparams = jax.random.split(key)

    x = jax.random.normal(kx, (2, 4, 16, 16), dtype=jnp.float32)

    fwd = jax.jit(random_straight_cut, static_argnames=("p", "occlusion_fraction"))

    # p=1.0 so the occlusion (Pallas) branch is exercised deterministically
    out, (b_value, m, corner_id, apply_flag) = fwd(
        x, kparams, p=1.0, occlusion_fraction=(0.25, 0.45))
    out = jax.block_until_ready(out)

    ref = _reference(x, b_value, m, corner_id, apply_flag)
    assert out.shape == x.shape and out.dtype == x.dtype
    assert jnp.allclose(out, ref, atol=1e-6), "mismatch vs reference (apply branch)"

    # p=0.0 exercises the lax.cond identity fast path (no kernel launched)
    out_id, _ = fwd(x, kparams, p=0.0, occlusion_fraction=(0.25, 0.45))
    out_id = jax.block_until_ready(out_id)
    assert jnp.array_equal(out_id, x), "identity branch modified the input"

    print("KERNEL_OK")
</pallas_src>

<mosaic_0001>
module attributes {stable_mosaic.version = 11 : i64} {
  func.func @_occlude_kernel(%arg0: i32, %arg1: i32, %arg2: memref<1x256xf32, #tpu.memory_space<vmem>>, %arg3: memref<8x256xf32, #tpu.memory_space<vmem>>, %arg4: memref<8x256xf32, #tpu.memory_space<vmem>>) attributes {dimension_semantics = [#tpu.dimension_semantics<parallel>, #tpu.dimension_semantics<parallel>], iteration_bounds = array<i64: 1, 1>, scalar_prefetch = 0 : i64, scratch_operands = 0 : i64, tpu.core_type = #tpu.core_type<tc>, window_params = [{transform_indices = @transform_0, window_bounds = array<i64: 1, 256>}, {transform_indices = @transform_1, window_bounds = array<i64: 8, 256>}, {transform_indices = @transform_2, window_bounds = array<i64: 8, 256>}]} {
    %c0 = arith.constant 0 : index
    %c0_0 = arith.constant 0 : index
    %0 = vector.load %arg3[%c0, %c0_0] : memref<8x256xf32, #tpu.memory_space<vmem>>, vector<8x256xf32>
    %c0_1 = arith.constant 0 : index
    %c0_2 = arith.constant 0 : index
    %1 = vector.load %arg2[%c0_1, %c0_2] : memref<1x256xf32, #tpu.memory_space<vmem>>, vector<1x256xf32>
    %cst = arith.constant 0.000000e+00 : f32
    %2 = vector.broadcast %cst : f32 to vector<1x256xf32>
    %3 = arith.cmpf ogt, %1, %2 : vector<1x256xf32>
    %4 = arith.extui %3 : vector<1x256xi1> to vector<1x256xi32>
    %5 = arith.sitofp %4 : vector<1x256xi32> to vector<1x256xf32>
    %6 = vector.broadcast %5 : vector<1x256xf32> to vector<8x256xf32>
    %7 = arith.mulf %6, %0 : vector<8x256xf32>
    %c0_3 = arith.constant 0 : index
    %c0_4 = arith.constant 0 : index
    %8 = vector.load %arg4[%c0_3, %c0_4] : memref<8x256xf32, #tpu.memory_space<vmem>>, vector<8x256xf32>
    tpu.vector_store %arg4[%c0_3, %c0_4], %7 {strides = array<i32>} : memref<8x256xf32, #tpu.memory_space<vmem>>, vector<8x256xf32>,
    return
  }
  func.func @transform_0(%arg0: i32, %arg1: i32) -> (i32, i32) {
    %c0_i32 = arith.constant 0 : i32
    %c0_i32_0 = arith.constant 0 : i32
    return %c0_i32, %arg1 : i32, i32
  }
  func.func @transform_1(%arg0: i32, %arg1: i32) -> (i32, i32) {
    %c0_i32 = arith.constant 0 : i32
    return %arg0, %arg1 : i32, i32
  }
  func.func @transform_2(%arg0: i32, %arg1: i32) -> (i32, i32) {
    %c0_i32 = arith.constant 0 : i32
    return %arg0, %arg1 : i32, i32
  }
}

</mosaic_0001>

<bundles_post_ra>
// kernel: branch_1_fun.1
= control target key start
LH: loop header
LB: loop body
LE: loop exit
PB: predicated region body
PF: predicated region fallthrough
CT: control target
= control target key end

     0   :  { %v18_v0 = vlaneseq  ;;  %v38_v3 = vmov 0.0   ;;  %s69_s0 = inlined_call_operand.vmem [shape: f32[1,256], index: 0, kind: input, shape index: {}]   ;;  %s70_s1 = inlined_call_operand.vmem [shape: f32[8,256], index: 1, kind: input, shape index: {}]   ;;  %s71_s2 = inlined_call_operand.vmem [shape: f32[8,256], index: 2, kind: output, shape index: {}]  }
   0x1   :  { %v13_v1 = vld [vmem:[%s69_s0] sm:$0x3]  ;;  %v12_v8 = vld [vmem:[%s70_s1 + $0x8] sm:$0xff] }
   0x2   :  { %vm14_vm0 = vcmp.gt.f32.partialorder %v13_v1, 0.0  ;;  %v19_v2 = vshrl.u32 %v18_v0, 7  ;;  %v11_v7 = vld [vmem:[%s70_s1] sm:$0xff] }
   0x3   :  { %v36_v4 = vsel %vm14_vm0, 1.0, %v38_v3 }
   0x4   :  { %v20_v5 = vsub.s32 0, %v19_v2  ;;  %v24_v6 = vsub.s32 1, %v19_v2 }
   0x6   :  { %v21_v9 = vrot.slane %v36_v4, %v20_v5  ;;  %v25_v10 = vrot.slane %v36_v4, %v24_v6 }
   0x8   :  { %v28_v11 = vmul.f32 %v21_v9, %v11_v7  ;;  %v29_v12 = vmul.f32 %v25_v10, %v12_v8 }
   0xa   :  { %30 = vst [vmem:[%s71_s2] sm:$0xff] %v28_v11  ;;  %31 = vst [vmem:[%s71_s2 + $0x8] sm:$0xff] %v29_v12 }

</bundles_post_ra>
